<compile_context>
chip_gen: v7x
topology: tpu7x:2x2x1
jax: 0.10.0
libtpu: 0.0.40
codegen_flags: <defaults>
</compile_context>

<pallas_src>
import functools

import jax
import jax.numpy as jnp
from jax.experimental import pallas as pl
from jax.experimental.pallas import tpu as pltpu


def _round_up(x, n):
    return ((x + n - 1) // n) * n


def _symmetric_loss_kernel(*refs, num_layers, num_symm, blocks_per_split,
                           tile_rows, chunk_rows, total_rows, needs_mask,
                           t1, t2):
    """refs = (layer_0..layer_{L-1}, truth, symm_0..symm_{S-1}, out).

    out is a (1, 8, 128) f32 block per parallel split; it stays VMEM-resident
    across the inner ("arbitrary") grid axis and is used as the accumulator.
    """
    layer_refs = refs[:num_layers]
    truth_ref = refs[num_layers]
    symm_refs = refs[num_layers + 1:num_layers + 1 + num_symm]
    out_ref = refs[num_layers + 1 + num_symm]

    p = pl.program_id(0)          # parallel split (TensorCore on v7x)
    i = pl.program_id(1)          # sequential block within the split

    @pl.when(i == 0)
    def _init():
        out_ref[...] = jnp.zeros_like(out_ref)

    n_chunks = tile_rows // chunk_rows
    # Logical global row of this tile's first row (unclamped: used only for the
    # validity mask, independent of which block was physically DMA'd).
    block_row0 = (p * blocks_per_split + i) * tile_rows

    def chunk_body(c, acc):
        row_start = c * chunk_rows
        if not isinstance(row_start, int):
            row_start = pl.multiple_of(row_start, chunk_rows)
        sl = pl.ds(row_start, chunk_rows)

        if needs_mask:
            remaining = total_rows - (block_row0 + c * chunk_rows)
            row_ids = jax.lax.broadcasted_iota(jnp.int32, (chunk_rows, 128), 0)
            mask = row_ids < remaining

        truth_c = truth_ref[sl, :].astype(jnp.float32)

        # sum_l sqrt(l - truth)  (and mean(sort(last - truth)) == mean(last - truth)).
        # NOTE: as in the PyTorch source, sqrt of a negative (layer < truth)
        # intentionally yields NaN — no clamp is applied.
        sqrt_layers = None
        diff_last = None
        for li in range(num_layers):
            d = layer_refs[li][sl, :].astype(jnp.float32) - truth_c
            if needs_mask:
                d = jnp.where(mask, d, 0.0)      # pad rows contribute exactly 0
            s = jnp.sqrt(d)
            sqrt_layers = s if sqrt_layers is None else sqrt_layers + s
            if li == num_layers - 1:
                diff_last = d

        def fold(x):
            # (chunk_rows, 128) -> (8, 128): plain full-vreg VPU adds.
            return x.reshape(chunk_rows // 8, 8, 128).sum(axis=0)

        contrib = fold(diff_last) + t1 * fold(sqrt_layers)

        if num_symm > 0:
            sqrt_symm = None
            for si in range(num_symm):
                v = symm_refs[si][sl, :].astype(jnp.float32)
                if needs_mask:
                    v = jnp.where(mask, v, 0.0)
                s = jnp.sqrt(v)
                sqrt_symm = s if sqrt_symm is None else sqrt_symm + s
            contrib = contrib + t2 * fold(sqrt_symm)

        return acc + contrib

    if n_chunks == 1:
        acc = chunk_body(0, out_ref[0])
    else:
        acc = jax.lax.fori_loop(0, n_chunks, chunk_body, out_ref[0],
                                unroll=True)
    out_ref[0] = acc


def symmetric_loss(layers, truth, symm, *, t1, t2):
    """layers: list of (B,C,H,W); truth: (B,C,H,W); symm: list of (B,C,H,W)."""
    assert len(layers) >= 1, "SymmetricLoss needs at least one layer (layers[-1])"
    m = truth.size
    # TODO(synk): support element counts not divisible by 128 (would require a
    # real pad copy or a 1-D ragged tail path).
    assert m % 128 == 0, "flattened element count must be a multiple of 128"
    r = m // 128

    num_layers, num_symm = len(layers), len(symm)
    num_tensors = num_layers + num_symm + 1

    itemsize = jnp.dtype(truth.dtype).itemsize
    row_align = 8 * max(1, 4 // itemsize)        # 8 rows f32, 16 bf16, 32 int8/fp8

    # Free metadata reshapes to lane-dense (R, 128) slabs — no HBM copies.
    layers2d = [l.reshape(r, 128) for l in layers]
    symm2d = [s.reshape(r, 128) for s in symm]
    truth2d = truth.reshape(r, 128)

    # Leading "parallel" axis: shards the row range across both TensorCores on
    # v7x; on single-core v5e/v6e it is a harmless 2-step sequential outer loop.
    NSPLIT = 2

    # ---- tile sizing (generation-aware budget) ----------------------------
    # Double-buffered input working set = 2 * num_tensors * TR * 128 * itemsize.
    # Keep it under ~36 MiB: fits v7x's 64 MiB physical VMEM with headroom for
    # chunk temporaries; v5e/v6e have 128 MiB physical (we raise v5e's 16 MiB
    # scoped default explicitly below).  TR is kept in the 512-2048 row range
    # whenever the input is big enough — the dominant lever for a mem-bound
    # kernel (measured: 128-row tiles ~29% of HBM BW, 512+ rows ~85%+).
    CHUNK_ROWS = 128
    TR_MAX = 2048
    TILE_BUDGET = 36 * 1024 * 1024
    tr = TILE_BUDGET // (2 * num_tensors * 128 * itemsize)
    tr = max(CHUNK_ROWS, min(TR_MAX, tr))
    tr = (tr // CHUNK_ROWS) * CHUNK_ROWS

    rows_per_split = pl.cdiv(r, NSPLIT)
    if rows_per_split <= tr:
        # Small input: one (sublane-aligned) block per split, single chunk.
        tr = _round_up(max(rows_per_split, 1), row_align)
        chunk_rows = tr
    else:
        chunk_rows = CHUNK_ROWS

    blocks_per_split = pl.cdiv(r, NSPLIT * tr)
    covered_rows = NSPLIT * blocks_per_split * tr
    needs_mask = covered_rows != r
    max_block = pl.cdiv(r, tr) - 1               # last block holding any valid row

    def in_index_map(pidx, bidx):
        blk = pidx * blocks_per_split + bidx
        # Clamp so tail grid steps that lie entirely past the array re-read the
        # last valid block (no OOB DMA start); their rows are masked to zero.
        return (jnp.minimum(blk, max_block), 0)

    tile_spec = pl.BlockSpec((tr, 128), in_index_map)
    in_specs = [tile_spec] * num_tensors

    kernel = functools.partial(
        _symmetric_loss_kernel,
        num_layers=num_layers,
        num_symm=num_symm,
        blocks_per_split=blocks_per_split,
        tile_rows=tr,
        chunk_rows=chunk_rows,
        total_rows=r,
        needs_mask=needs_mask,
        t1=float(t1),        # Python floats -> jaxpr literals (no captured f32[] consts)
        t2=float(t2),
    )

    partials = pl.pallas_call(
        kernel,
        out_shape=jax.ShapeDtypeStruct((NSPLIT, 8, 128), jnp.float32),
        grid_spec=pltpu.PrefetchScalarGridSpec(
            num_scalar_prefetch=0,
            grid=(NSPLIT, blocks_per_split),
            in_specs=in_specs,
            out_specs=pl.BlockSpec((1, 8, 128), lambda pidx, bidx: (pidx, 0, 0)),
        ),
        compiler_params=pltpu.CompilerParams(
            dimension_semantics=("parallel", "arbitrary"),
            # Above v5e's 16 MiB scoped default, below v7x's 64 MiB physical.
            vmem_limit_bytes=48 * 1024 * 1024,
        ),
        cost_estimate=pl.CostEstimate(
            flops=(2 * num_layers + num_symm + 2) * m,
            transcendentals=(num_layers + num_symm) * m,
            bytes_accessed=num_tensors * m * itemsize + NSPLIT * 8 * 128 * 4,
        ),
    )(*layers2d, truth2d, *symm2d)

    # Tiny final reduction (2*8*128 f32) + /m outside the kernel.
    return jnp.sum(partials) * (1.0 / float(m))


if __name__ == "__main__":
    # cfg.l_layer / cfg.l_symmetric — deterministic synthetic hyperparameters.
    T1, T2 = 0.5, 0.25

    B, C, H, W = 2, 4, 16, 16
    key = jax.random.PRNGKey(0)
    k_truth, k_layers, k_symm = jax.random.split(key, 3)

    truth = jax.random.uniform(k_truth, (B, C, H, W), jnp.float32)
    # layers >= truth and symm >= 0 so sqrt stays real (the module implicitly
    # assumes non-negative arguments to sqrt).
    layers = [
        truth
        + jax.random.uniform(jax.random.fold_in(k_layers, i), (B, C, H, W), jnp.float32)
        for i in range(3)
    ]
    symm = [
        jax.random.uniform(jax.random.fold_in(k_symm, i), (B, C, H, W), jnp.float32)
        for i in range(2)
    ]

    loss = symmetric_loss(layers, truth, symm, t1=T1, t2=T2)
    loss = jax.block_until_ready(loss)

    # Pure-JAX reference for the same semantics.
    ref = jnp.mean(jnp.sort((layers[-1] - truth).reshape(-1)))
    for l in layers:
        ref += T1 * jnp.mean(jnp.sqrt(l - truth))
    for s in symm:
        ref += T2 * jnp.mean(jnp.sqrt(s))

    assert jnp.allclose(loss, ref, atol=1e-5, rtol=1e-5), (loss, ref)
    print("KERNEL_OK")
</pallas_src>

<mosaic_0001>
module attributes {stable_mosaic.version = 11 : i64} {
  func.func @_symmetric_loss_kernel(%arg0: i32, %arg1: i32, %arg2: memref<8x128xf32, #tpu.memory_space<vmem>>, %arg3: memref<8x128xf32, #tpu.memory_space<vmem>>, %arg4: memref<8x128xf32, #tpu.memory_space<vmem>>, %arg5: memref<8x128xf32, #tpu.memory_space<vmem>>, %arg6: memref<8x128xf32, #tpu.memory_space<vmem>>, %arg7: memref<8x128xf32, #tpu.memory_space<vmem>>, %arg8: memref<1x8x128xf32, #tpu.memory_space<vmem>>) attributes {dimension_semantics = [#tpu.dimension_semantics<parallel>, #tpu.dimension_semantics<arbitrary>], iteration_bounds = array<i64: 2, 1>, scalar_prefetch = 0 : i64, scratch_operands = 0 : i64, tpu.core_type = #tpu.core_type<tc>, window_params = [{transform_indices = @transform_0, window_bounds = array<i64: 8, 128>}, {transform_indices = @transform_1, window_bounds = array<i64: 8, 128>}, {transform_indices = @transform_2, window_bounds = array<i64: 8, 128>}, {transform_indices = @transform_3, window_bounds = array<i64: 8, 128>}, {transform_indices = @transform_4, window_bounds = array<i64: 8, 128>}, {transform_indices = @transform_5, window_bounds = array<i64: 8, 128>}, {transform_indices = @transform_6, window_bounds = array<i64: 1, 8, 128>}]} {
    %c0_i32 = arith.constant 0 : i32
    %0 = arith.cmpi eq, %arg1, %c0_i32 : i32
    %1 = arith.extui %0 : i1 to i32
    %c0_i32_0 = arith.constant 0 : i32
    %2 = arith.cmpi ne, %1, %c0_i32_0 : i32
    scf.if %2 {
      %cst_22 = arith.constant 0.000000e+00 : f32
      %38 = vector.broadcast %cst_22 : f32 to vector<1x8x128xf32>
      %c0_23 = arith.constant 0 : index
      %c0_24 = arith.constant 0 : index
      %c0_25 = arith.constant 0 : index
      %39 = vector.load %arg8[%c0_23, %c0_24, %c0_25] : memref<1x8x128xf32, #tpu.memory_space<vmem>>, vector<1x8x128xf32>
      tpu.vector_store %arg8[%c0_23, %c0_24, %c0_25], %38 {strides = array<i32>} : memref<1x8x128xf32, #tpu.memory_space<vmem>>, vector<1x8x128xf32>,
    } else {
    }
    %c0 = arith.constant 0 : index
    %c0_1 = arith.constant 0 : index
    %c0_2 = arith.constant 0 : index
    %3 = vector.load %arg8[%c0, %c0_1, %c0_2] : memref<1x8x128xf32, #tpu.memory_space<vmem>>, vector<1x8x128xf32>
    %4 = vector.shape_cast %3 : vector<1x8x128xf32> to vector<8x128xf32>
    %c0_3 = arith.constant 0 : index
    %c0_4 = arith.constant 0 : index
    %5 = vector.load %arg5[%c0_3, %c0_4] : memref<8x128xf32, #tpu.memory_space<vmem>>, vector<8x128xf32>
    %c0_5 = arith.constant 0 : index
    %c0_6 = arith.constant 0 : index
    %6 = vector.load %arg2[%c0_5, %c0_6] : memref<8x128xf32, #tpu.memory_space<vmem>>, vector<8x128xf32>
    %7 = arith.subf %6, %5 : vector<8x128xf32>
    %8 = math.sqrt %7 : vector<8x128xf32>
    %c0_7 = arith.constant 0 : index
    %c0_8 = arith.constant 0 : index
    %9 = vector.load %arg3[%c0_7, %c0_8] : memref<8x128xf32, #tpu.memory_space<vmem>>, vector<8x128xf32>
    %10 = arith.subf %9, %5 : vector<8x128xf32>
    %11 = math.sqrt %10 : vector<8x128xf32>
    %12 = arith.addf %8, %11 : vector<8x128xf32>
    %c0_9 = arith.constant 0 : index
    %c0_10 = arith.constant 0 : index
    %13 = vector.load %arg4[%c0_9, %c0_10] : memref<8x128xf32, #tpu.memory_space<vmem>>, vector<8x128xf32>
    %14 = arith.subf %13, %5 : vector<8x128xf32>
    %15 = math.sqrt %14 : vector<8x128xf32>
    %16 = arith.addf %12, %15 : vector<8x128xf32>
    %17 = vector.shape_cast %14 : vector<8x128xf32> to vector<1x8x128xf32>
    %cst = arith.constant dense<0.000000e+00> : vector<8x128xf32>
    %18 = vector.multi_reduction <add>, %17, %cst [0] : vector<1x8x128xf32> to vector<8x128xf32>
    %19 = vector.shape_cast %16 : vector<8x128xf32> to vector<1x8x128xf32>
    %cst_11 = arith.constant dense<0.000000e+00> : vector<8x128xf32>
    %20 = vector.multi_reduction <add>, %19, %cst_11 [0] : vector<1x8x128xf32> to vector<8x128xf32>
    %cst_12 = arith.constant 5.000000e-01 : f32
    %21 = vector.broadcast %cst_12 : f32 to vector<8x128xf32>
    %22 = arith.mulf %21, %20 : vector<8x128xf32>
    %23 = arith.addf %18, %22 : vector<8x128xf32>
    %c0_13 = arith.constant 0 : index
    %c0_14 = arith.constant 0 : index
    %24 = vector.load %arg6[%c0_13, %c0_14] : memref<8x128xf32, #tpu.memory_space<vmem>>, vector<8x128xf32>
    %25 = math.sqrt %24 : vector<8x128xf32>
    %c0_15 = arith.constant 0 : index
    %c0_16 = arith.constant 0 : index
    %26 = vector.load %arg7[%c0_15, %c0_16] : memref<8x128xf32, #tpu.memory_space<vmem>>, vector<8x128xf32>
    %27 = math.sqrt %26 : vector<8x128xf32>
    %28 = arith.addf %25, %27 : vector<8x128xf32>
    %29 = vector.shape_cast %28 : vector<8x128xf32> to vector<1x8x128xf32>
    %cst_17 = arith.constant dense<0.000000e+00> : vector<8x128xf32>
    %30 = vector.multi_reduction <add>, %29, %cst_17 [0] : vector<1x8x128xf32> to vector<8x128xf32>
    %cst_18 = arith.constant 2.500000e-01 : f32
    %31 = vector.broadcast %cst_18 : f32 to vector<8x128xf32>
    %32 = arith.mulf %31, %30 : vector<8x128xf32>
    %33 = arith.addf %23, %32 : vector<8x128xf32>
    %34 = arith.addf %4, %33 : vector<8x128xf32>
    %c0_19 = arith.constant 0 : index
    %c0_20 = arith.constant 0 : index
    %c0_21 = arith.constant 0 : index
    %35 = vector.load %arg8[%c0_19, %c0_20, %c0_21] : memref<1x8x128xf32, #tpu.memory_space<vmem>>, vector<1x8x128xf32>
    %36 = vector.shape_cast %35 : vector<1x8x128xf32> to vector<8x128xf32>
    %37 = vector.shape_cast %34 : vector<8x128xf32> to vector<1x8x128xf32>
    tpu.vector_store %arg8[%c0_19, %c0_20, %c0_21], %37 {strides = array<i32>} : memref<1x8x128xf32, #tpu.memory_space<vmem>>, vector<1x8x128xf32>,
    return
  }
  func.func @transform_0(%arg0: i32, %arg1: i32) -> (i32, i32) {
    %c1_i32 = arith.constant 1 : i32
    %0 = arith.muli %arg0, %c1_i32 : i32
    %1 = arith.addi %0, %arg1 : i32
    %c1_i32_0 = arith.constant 1 : i32
    %2 = arith.minsi %1, %c1_i32_0 : i32
    %c0_i32 = arith.constant 0 : i32
    %c0_i32_1 = arith.constant 0 : i32
    return %2, %c0_i32 : i32, i32
  }
  func.func @transform_1(%arg0: i32, %arg1: i32) -> (i32, i32) {
    %c1_i32 = arith.constant 1 : i32
    %0 = arith.muli %arg0, %c1_i32 : i32
    %1 = arith.addi %0, %arg1 : i32
    %c1_i32_0 = arith.constant 1 : i32
    %2 = arith.minsi %1, %c1_i32_0 : i32
    %c0_i32 = arith.constant 0 : i32
    %c0_i32_1 = arith.constant 0 : i32
    return %2, %c0_i32 : i32, i32
  }
  func.func @transform_2(%arg0: i32, %arg1: i32) -> (i32, i32) {
    %c1_i32 = arith.constant 1 : i32
    %0 = arith.muli %arg0, %c1_i32 : i32
    %1 = arith.addi %0, %arg1 : i32
    %c1_i32_0 = arith.constant 1 : i32
    %2 = arith.minsi %1, %c1_i32_0 : i32
    %c0_i32 = arith.constant 0 : i32
    %c0_i32_1 = arith.constant 0 : i32
    return %2, %c0_i32 : i32, i32
  }
  func.func @transform_3(%arg0: i32, %arg1: i32) -> (i32, i32) {
    %c1_i32 = arith.constant 1 : i32
    %0 = arith.muli %arg0, %c1_i32 : i32
    %1 = arith.addi %0, %arg1 : i32
    %c1_i32_0 = arith.constant 1 : i32
    %2 = arith.minsi %1, %c1_i32_0 : i32
    %c0_i32 = arith.constant 0 : i32
    %c0_i32_1 = arith.constant 0 : i32
    return %2, %c0_i32 : i32, i32
  }
  func.func @transform_4(%arg0: i32, %arg1: i32) -> (i32, i32) {
    %c1_i32 = arith.constant 1 : i32
    %0 = arith.muli %arg0, %c1_i32 : i32
    %1 = arith.addi %0, %arg1 : i32
    %c1_i32_0 = arith.constant 1 : i32
    %2 = arith.minsi %1, %c1_i32_0 : i32
    %c0_i32 = arith.constant 0 : i32
    %c0_i32_1 = arith.constant 0 : i32
    return %2, %c0_i32 : i32, i32
  }
  func.func @transform_5(%arg0: i32, %arg1: i32) -> (i32, i32) {
    %c1_i32 = arith.constant 1 : i32
    %0 = arith.muli %arg0, %c1_i32 : i32
    %1 = arith.addi %0, %arg1 : i32
    %c1_i32_0 = arith.constant 1 : i32
    %2 = arith.minsi %1, %c1_i32_0 : i32
    %c0_i32 = arith.constant 0 : i32
    %c0_i32_1 = arith.constant 0 : i32
    return %2, %c0_i32 : i32, i32
  }
  func.func @transform_6(%arg0: i32, %arg1: i32) -> (i32, i32, i32) {
    %c0_i32 = arith.constant 0 : i32
    %c0_i32_0 = arith.constant 0 : i32
    %c0_i32_1 = arith.constant 0 : i32
    return %arg0, %c0_i32, %c0_i32_0 : i32, i32, i32
  }
}

</mosaic_0001>

<bundles_post_ra>
// kernel: tpu_custom_call.1
= control target key start
LH: loop header
LB: loop body
LE: loop exit
PB: predicated region body
PF: predicated region fallthrough
CT: control target
= control target key end

     0   :  { %s1581_s0 = inlined_call_operand.hbm [shape: f32[16,128], index: 0, kind: input, shape index: {}]   ;;  %s1582_s1 = inlined_call_operand.hbm [shape: f32[16,128], index: 1, kind: input, shape index: {}]   ;;  %s1583_s2 = inlined_call_operand.hbm [shape: f32[16,128], index: 2, kind: input, shape index: {}]   ;;  %s1584_s3 = inlined_call_operand.hbm [shape: f32[16,128], index: 3, kind: input, shape index: {}]   ;;  %s1585_s4 = inlined_call_operand.hbm [shape: f32[16,128], index: 4, kind: input, shape index: {}]   ;;  %s1586_s5 = inlined_call_operand.vmem [shape: f32[16,128], index: 5, kind: input, shape index: {}]   ;;  %s1587_s6 = inlined_call_operand.hbm [shape: f32[2,8,128], index: 6, kind: output, shape index: {}]  }
   0x1   :  { %1604 = sst [smem:[#allocation25_spill]] %s1581_s0 }
   0x2   :  { %1605 = sst [smem:[#allocation26_spill]] %s1582_s1 }
   0x3   :  { %1606 = sst [smem:[#allocation27_spill]] %s1584_s3 }
   0x4   :  { %1607 = sst [smem:[#allocation28_spill]] %s1587_s6 }
   0x5   :  { %11 = vsyncpa [#allocation3], 0 }
   0x6   :  { %13 = vsyncpa [#allocation3 + $0x1], 0 }
   0x7   :  { %14 = vsyncpa [#allocation6], 0 }
   0x8   :  { %16 = vsyncpa [#allocation6 + $0x1], 0 }
   0x9   :  { %17 = vsyncpa [#allocation9], 0 }
   0xa   :  { %19 = vsyncpa [#allocation9 + $0x1], 0 }
   0xb   :  { %20 = vsyncpa [#allocation4], 0 }
   0xc   :  { %22 = vsyncpa [#allocation4 + $0x1], 0  ;;  %s1224_s21 = smov 0   ;;  %s1226_s22 = smov 0  }
   0xd   :  { %s1228_s23 = smov 0   ;;  %s1230_s24 = smov 0  }
   0xe   :  { %s1232_s25 = smov 0   ;;  %s1234_s26 = smov 0  }
   0xf   :  { %s1236_s27 = smov 0   ;;  %s1238_s28 = smov 0  }
  0x10   :  { %s1240_s29 = smov 0  }
  0x11 LB: > { %1608 = sst [smem:[#allocation16_spill]] %s1149_s21  ;;  %s1268_s30 = sadd.s32 4294967295, %s1181_s29   ;;  %s1181_s29 = sphi %s1240_s29, %s28_s29   ;;  %s1177_s28 = sphi %s1238_s28, %s1647_s28   ;;  %s1173_s27 = sphi %s1236_s27, %s1646_s27   ;;  %s1169_s26 = sphi %s1234_s26, %s1645_s26   ;;  %s1165_s25 = sphi %s1232_s25, %s1651_s25   ;;  %s1161_s24 = sphi %s1230_s24, %s1650_s24   ;;  %s1157_s23 = sphi %s1228_s23, %s1643_s23   ;;  %s1153_s22 = sphi %s1226_s22, %s1649_s22   ;;  %s1149_s21 = sphi %s1224_s21, %s1648_s21  }
  0x12   : > { %1609 = sst [smem:[#allocation17_spill]] %s1157_s23  ;;  %s772_s7 = sadd.s32 4294967294, %s1181_s29  }
  0x13   : > { %1610 = sst [smem:[#allocation18_spill]] %s1169_s26  ;;  %s40_s8 = sadd.s32 1, %s1177_s28 }
  0x14   : > { %1611 = sst [smem:[#allocation19_spill]] %s1177_s28  ;;  %p45_p0 = scmp.lt.s32.totalorder %s1177_s28, 1 }
  0x15   : > { %1612 = sst [smem:[#allocation20_spill]] %s1181_s29  ;;  %p42_p1 = scmp.ge.s32.totalorder %s40_s8, 2 }
  0x16   : > { %s53_s9 = sadd.s32 1, %s1169_s26  ;;  %p60_p2 = scmp.ne.s32.totalorder %s1169_s26, %s1165_s25 }
  0x17   : > { %s46_s10 = scalar_select %p45_p0, %s1177_s28, 1 }
  0x18   : > { %s1653_s8 = smov (%p42_p1, %s40_s8), 0  ;;  %p61_p3 = scmp.eq.s32.totalorder %s1181_s29, 0 }
  0x19   : > { %1613 = sst [smem:[#allocation21_spill]] %s1653_s8  ;;  %p48_p4 = scmp.lt.s32.totalorder %s1653_s8, 1 }
  0x1a   : > { %p66_p5 = scmp.ne.s32.totalorder %s1165_s25, %s1161_s24  ;;  %p1282_p6 = por %p61_p3, %p60_p2 }
  0x1b   : > { %p67_p7 = scmp.eq.s32.totalorder %s1268_s30, 0  ;;  %s236_s14 = ssub.s32 %s1177_s28, %s1653_s8 }
  0x1c   : > { %s49_s12 = scalar_select %p48_p4, %s1653_s8, 1 }
  0x1d   : > { %p1288_p8 = por %p67_p7, %p66_p5  ;;  %p237_p9 = scmp.eq.s32.totalorder %s236_s14, 0 }
  0x1e   : > { %s50_s15 = ssub.s32 %s46_s10, %s49_s12  ;;  %s239_s16 = sadd.s32 1, %s1157_s23 }
  0x1f   : > { %s1615_s13 = scalar_select %p1288_p8, 1, 0 }
  0x20   : > { %p51_p10 = scmp.eq.s32.totalorder %s50_s15, 0  ;;  %p249_p11 = scmp.ne.s32.totalorder %s1157_s23, %s1153_s22 }
  0x21   : > { %s1296_s17 = scalar_select %p237_p9, %s1157_s23, %s239_s16  }
  0x22   : > { %s1299_s18 = scalar_select %p51_p10, %s1169_s26, %s53_s9  }
  0x23   : > { %1616 = sst [smem:[#allocation22_spill]] %s1296_s17  ;;  %p250_p12 = scmp.eq.s32.totalorder %s1268_s30, 1 }
  0x24   : > { %1617 = sst [smem:[#allocation23_spill]] %s1299_s18  ;;  %p255_p13 = scmp.ne.s32.totalorder %s1153_s22, %s1149_s21 }
  0x25   : > { %p256_p0 = scmp.eq.s32.totalorder %s772_s7, 1  ;;  %p1306_p1 = por %p250_p12, %p249_p11 }
  0x26   : > { %p832_p4 = scmp.lt.s32.totalorder %s1181_s29, 2  ;;  %s1589_s24 = sand.u32 1, %s1169_s26  }
  0x27   : > { %s1618_s19 = scalar_select %p1306_p1, 1, 0 }
  0x28   : > { %p1311_p3 = por %p256_p0, %p255_p13  ;;  %s1317_s12 = sshll.u32 %s46_s10, 7 }
  0x29   : > { %s1321_s9 = sshll.u32 %s1589_s24, 3  ;;  %p1325_p5 = pnand %p832_p4, %p1282_p6 }
  0x2a   : > { %s1619_s20 = scalar_select %p1311_p3, 1, 0 }
  0x2b   : > { %s1621_s7 = scalar_select %p1325_p5, 1, 0 }
  0x2c   : > { %1620 = sst [smem:[#allocation24_spill]] %s1619_s20  ;;  %s1592_s14 = sand.u32 1, %s1181_s29  }
  0x2d   : > { %s1622_s1 = sld [smem:[#allocation26_spill]]  ;;  %s301_s10 = scalar_lea.vmem [#allocation5], %s1321_s9 }
  0x2e   : > { %s311_s24 = sshll.u32 %s301_s10, 4  ;;  %s1342_s11 = scalar_lea.sflag [#allocation6], %s1592_s14  ;;  %s1337_s24 = int_to_ptr.vmem [resolvable:$true] %s311_s24 }
  0x2f   : > { %p1348_p9 = pneg %p1325_p5 }
  0x33   : > { %s1334_s8 = scalar_lea.hbm %s1622_s1, %s1317_s12  ;;  %s922_s10 = scalar_lea.hbm %s1622_s1, 256 }
  0x34   : > { %s917_s28 = scalar_lea.hbm %s1334_s8, 128  ;;  %p923_p12 = scmp.lt.u32.totalorder %s1334_s8, %s1622_s1 }
  0x35   : > { %p918_p6 = scmp.ne.s32.totalorder %s1334_s8, %s917_s28  ;;  %p924_p13 = scmp.lt.u32.totalorder %s922_s10, %s917_s28 }
  0x36   : > { %p926_p4 = scmp.lt.u32.totalorder %s917_s28, %s1334_s8 }
  0x37   : > { %p920_p10 = pnand %p1348_p9, %p918_p6  ;;  %p925_p0 = por %p924_p13, %p923_p12 }
  0x39   : > { %p921_p11 = pneg %p920_p10  ;;  %p927_p2 = por %p926_p4, %p925_p0 }
  0x3b   : > { %p928_p7 = pnand %p927_p2, %p921_p11 }
  0x3d   : > { %931 = shalt.err (!%p928_p7)
}
  0x3e   : > { %s932_s14 = scalar_lea.vmem %s1337_s24, 128  ;;  %s1183_s15 = smov [#allocation5]  }
  0x3f   : > { %p933_p6 = scmp.ne.s32.totalorder %s1337_s24, %s932_s14  ;;  %s937_s16 = sshll.u32 %s1183_s15, 4  ;;  %s938_s16 = int_to_ptr.vmem [resolvable:$false] %s937_s16 }
  0x40   : > { %s939_s23 = scalar_lea.vmem %s938_s16, 256  ;;  %p940_p1 = scmp.lt.s32.totalorder %s1337_s24, %s938_s16 }
  0x41   : > { %p935_p10 = pnand %p933_p6, %p1348_p9  ;;  %p941_p8 = scmp.lt.s32.totalorder %s939_s23, %s932_s14 }
  0x43   : > { %p936_p3 = pneg %p935_p10  ;;  %p942_p12 = por %p941_p8, %p940_p1 }
  0x45   : > { %p943_p13 = pnand %p942_p12, %p936_p3 }
  0x47   : > { %946 = shalt.err (!%p943_p13)
}
  0x48   : > { %818 = dma.hbm_to_vmem [thread:$0]  (!%p1325_p5), %s1334_s8, 128, %s1337_s24, %s1342_s11  }
  0x49   : > { %p392_p2 = scmp.lt.s32.totalorder %s1181_s29, 3  ;;  %s1624_s3 = sld [smem:[#allocation27_spill]] }
  0x4a   : > { %p1625_p8 = scmp.ge.s32.totalorder %s1181_s29, 1  ;;  %s343_s15 = scalar_lea.vmem [#allocation8], %s1321_s9 }
  0x4b   : > { %s353_s16 = sshll.u32 %s343_s15, 4  ;;  %s1627_s23 = sand.u32 1, %s1181_s29   ;;  %s354_s16 = int_to_ptr.vmem [resolvable:$true] %s353_s16 }
  0x4c   : > { %p1381_p1 = pnand %p1625_p8, %p392_p2  ;;  %s1388_s8 = scalar_lea.sflag [#allocation9], %s1627_s23 }
  0x4e   : > { %s1626_s10 = scalar_select %p1381_p1, 1, 0 }
  0x4f   : > { %s1377_s14 = scalar_lea.hbm %s1624_s3, %s1317_s12  ;;  %s952_s1 = scalar_lea.hbm %s1624_s3, 256 }
  0x50   : > { %s947_s24 = scalar_lea.hbm %s1377_s14, 128  ;;  %p953_p0 = scmp.lt.u32.totalorder %s1377_s14, %s1624_s3 }
  0x51   : > { %p948_p3 = scmp.ne.s32.totalorder %s1377_s14, %s947_s24  ;;  %p954_p4 = scmp.lt.u32.totalorder %s952_s1, %s947_s24 }
  0x52   : > { %p956_p10 = scmp.lt.u32.totalorder %s947_s24, %s1377_s14 }
  0x53   : > { %p950_p7 = pnand %p948_p3, %p1348_p9  ;;  %p955_p6 = por %p954_p4, %p953_p0 }
  0x55   : > { %p951_p11 = pneg %p950_p7  ;;  %p957_p12 = por %p956_p10, %p955_p6 }
  0x57   : > { %p958_p13 = pnand %p957_p12, %p951_p11 }
  0x59   : > { %961 = shalt.err (!%p958_p13)
}
  0x5a   : > { %s962_s15 = scalar_lea.vmem %s354_s16, 128  ;;  %s1184_s23 = smov [#allocation8]  }
  0x5b   : > { %p963_p2 = scmp.ne.s32.totalorder %s354_s16, %s962_s15  ;;  %s967_s29 = sshll.u32 %s1184_s23, 4  ;;  %s968_s29 = int_to_ptr.vmem [resolvable:$false] %s967_s29 }
  0x5c   : > { %s969_s28 = scalar_lea.vmem %s968_s29, 256  ;;  %p970_p7 = scmp.lt.s32.totalorder %s354_s16, %s968_s29 }
  0x5d   : > { %p965_p8 = pnand %p963_p2, %p1348_p9  ;;  %p971_p1 = scmp.lt.s32.totalorder %s969_s28, %s962_s15 }
  0x5f   : > { %p966_p3 = pneg %p965_p8  ;;  %p972_p5 = por %p971_p1, %p970_p7 }
  0x61   : > { %p973_p0 = pnand %p972_p5, %p966_p3 }
  0x63   : > { %976 = shalt.err (!%p973_p0)
}
  0x64   : > { %p1628_p4 = scmp.ne.s32.totalorder %s1621_s7, 0  ;;  %s1629_s0 = sld [smem:[#allocation25_spill]] }
  0x65   : > { %s280_s29 = scalar_lea.vmem [#allocation2], %s1321_s9  ;;  %s1421_s23 = scalar_lea.hbm %s1583_s2, %s1317_s12 }
  0x66   : > { %824 = dma.hbm_to_vmem [thread:$0]  (!%p1628_p4), %s1377_s14, 128, %s354_s16, %s1388_s8  }
  0x67   : > { %s290_s24 = sshll.u32 %s280_s29, 4  ;;  %s1630_s28 = sand.u32 1, %s1169_s26   ;;  %s1415_s24 = int_to_ptr.vmem [resolvable:$true] %s290_s24 }
  0x68   : > { %s277_s14 = scalar_lea.sflag [#allocation3], %s1630_s28 }
  0x6a   : > { %s1412_s20 = scalar_lea.hbm %s1629_s0, %s1317_s12  ;;  %s982_s3 = scalar_lea.hbm %s1629_s0, 256 }
  0x6b   : > { %s977_s16 = scalar_lea.hbm %s1412_s20, 128  ;;  %p983_p6 = scmp.lt.u32.totalorder %s1412_s20, %s1629_s0 }
  0x6c   : > { %p978_p5 = scmp.ne.s32.totalorder %s1412_s20, %s977_s16  ;;  %p984_p10 = scmp.lt.u32.totalorder %s982_s3, %s977_s16 }
  0x6d   : > { %p986_p13 = scmp.lt.u32.totalorder %s977_s16, %s1412_s20 }
  0x6e   : > { %p980_p1 = pnand %p978_p5, %p1348_p9  ;;  %p985_p12 = por %p984_p10, %p983_p6 }
  0x70   : > { %p981_p11 = pneg %p980_p1  ;;  %p987_p2 = por %p986_p13, %p985_p12 }
  0x72   : > { %p988_p8 = pnand %p987_p2, %p981_p11 }
  0x74   : > { %991 = shalt.err (!%p988_p8)
}
  0x75   : > { %s992_s17 = scalar_lea.vmem %s1415_s24, 128  ;;  %s1185_s15 = smov [#allocation2]  }
  0x76   : > { %p993_p3 = scmp.ne.s32.totalorder %s1415_s24, %s992_s17  ;;  %s997_s28 = sshll.u32 %s1185_s15, 4  ;;  %s998_s28 = int_to_ptr.vmem [resolvable:$false] %s997_s28 }
  0x77   : > { %s999_s6 = scalar_lea.vmem %s998_s28, 256  ;;  %p1000_p5 = scmp.lt.s32.totalorder %s1415_s24, %s998_s28 }
  0x78   : > { %p995_p7 = pnand %p993_p3, %p1348_p9  ;;  %p1001_p1 = scmp.lt.s32.totalorder %s999_s6, %s992_s17 }
  0x7a   : > { %p996_p0 = pneg %p995_p7  ;;  %p1002_p6 = por %p1001_p1, %p1000_p5 }
  0x7c   : > { %p1003_p10 = pnand %p1002_p6, %p996_p0 }
  0x7e   : > { %1006 = shalt.err (!%p1003_p10)
}
  0x7f   : > { %815 = dma.hbm_to_vmem [thread:$0]  (!%p1628_p4), %s1412_s20, 128, %s1415_s24, %s277_s14  }
  0x80   : > { %s322_s3 = scalar_lea.vmem [#allocation7], %s1321_s9  ;;  %s1451_s29 = scalar_lea.hbm %s1585_s4, %s1317_s12 }
  0x81   : > { %s332_s16 = sshll.u32 %s322_s3, 4  ;;  %s1007_s17 = scalar_lea.hbm %s1421_s23, 128  ;;  %s333_s16 = int_to_ptr.vmem [resolvable:$true] %s332_s16 }
  0x82   : > { %p1008_p11 = scmp.ne.s32.totalorder %s1421_s23, %s1007_s17  ;;  %s1012_s6 = scalar_lea.hbm %s1583_s2, 256 }
  0x83   : > { %p1013_p2 = scmp.lt.u32.totalorder %s1421_s23, %s1583_s2  ;;  %p1014_p8 = scmp.lt.u32.totalorder %s1012_s6, %s1007_s17 }
  0x84   : > { %p1010_p12 = pnand %p1008_p11, %p1348_p9  ;;  %p1016_p7 = scmp.lt.u32.totalorder %s1007_s17, %s1421_s23 }
  0x85   : > { %p1015_p3 = por %p1014_p8, %p1013_p2 }
  0x86   : > { %p1011_p13 = pneg %p1010_p12 }
  0x87   : > { %p1017_p0 = por %p1016_p7, %p1015_p3 }
  0x89   : > { %p1018_p5 = pnand %p1017_p0, %p1011_p13 }
  0x8b   : > { %1021 = shalt.err (!%p1018_p5)
}
  0x8c   : > { %s1022_s12 = scalar_lea.vmem %s333_s16, 128  ;;  %s1186_s20 = smov [#allocation7]  }
  0x8d   : > { %p1023_p1 = scmp.ne.s32.totalorder %s333_s16, %s1022_s12  ;;  %s1027_s24 = sshll.u32 %s1186_s20, 4  ;;  %s1028_s24 = int_to_ptr.vmem [resolvable:$false] %s1027_s24 }
  0x8e   : > { %s1029_s14 = scalar_lea.vmem %s1028_s24, 256  ;;  %p1030_p11 = scmp.lt.s32.totalorder %s333_s16, %s1028_s24 }
  0x8f   : > { %p1025_p6 = pnand %p1023_p1, %p1348_p9  ;;  %p1031_p12 = scmp.lt.s32.totalorder %s1029_s14, %s1022_s12 }
  0x91   : > { %p1026_p10 = pneg %p1025_p6  ;;  %p1032_p4 = por %p1031_p12, %p1030_p11 }
  0x93   : > { %p1033_p2 = pnand %p1032_p4, %p1026_p10 }
  0x95   : > { %1036 = shalt.err (!%p1033_p2)
}
  0x96   : > { %p1631_p8 = scmp.ne.s32.totalorder %s1621_s7, 0  ;;  %s364_s0 = scalar_lea.vmem [#allocation10], %s1321_s9 }
  0x97   : > { %s374_s26 = sshll.u32 %s364_s0, 4  ;;  %s1037_s3 = scalar_lea.hbm %s1451_s29, 128  ;;  %s375_s26 = int_to_ptr.vmem [resolvable:$true] %s374_s26 }
  0x98   : > { %821 = dma.hbm_to_vmem [thread:$0]  (!%p1631_p8), %s1421_s23, 128, %s333_s16, %s1342_s11  }
  0x99   : > { %p1038_p13 = scmp.ne.s32.totalorder %s1451_s29, %s1037_s3  ;;  %s1042_s17 = scalar_lea.hbm %s1585_s4, 256 }
  0x9a   : > { %p1043_p7 = scmp.lt.u32.totalorder %s1451_s29, %s1585_s4  ;;  %p1044_p0 = scmp.lt.u32.totalorder %s1042_s17, %s1037_s3 }
  0x9b   : > { %p1040_p3 = pnand %p1038_p13, %p1348_p9  ;;  %p1046_p1 = scmp.lt.u32.totalorder %s1037_s3, %s1451_s29 }
  0x9c   : > { %p1045_p5 = por %p1044_p0, %p1043_p7 }
  0x9d   : > { %p1041_p4 = pneg %p1040_p3 }
  0x9e   : > { %p1047_p6 = por %p1046_p1, %p1045_p5 }
  0xa0   : > { %p1048_p10 = pnand %p1047_p6, %p1041_p4 }
  0xa2   : > { %1051 = shalt.err (!%p1048_p10)
}
  0xa3   : > { %s1052_s9 = scalar_lea.vmem %s375_s26, 128  ;;  %s1187_s11 = smov [#allocation10]  }
  0xa4   : > { %p1053_p11 = scmp.ne.s32.totalorder %s375_s26, %s1052_s9  ;;  %s1057_s23 = sshll.u32 %s1187_s11, 4  ;;  %s1058_s23 = int_to_ptr.vmem [resolvable:$false] %s1057_s23 }
  0xa5   : > { %s1059_s16 = scalar_lea.vmem %s1058_s23, 256  ;;  %p1060_p13 = scmp.lt.s32.totalorder %s375_s26, %s1058_s23 }
  0xa6   : > { %p1055_p12 = pnand %p1053_p11, %p1348_p9  ;;  %p1061_p3 = scmp.lt.s32.totalorder %s1059_s16, %s1052_s9 }
  0xa8   : > { %p1056_p2 = pneg %p1055_p12  ;;  %p1062_p8 = por %p1061_p3, %p1060_p13 }
  0xaa   : > { %p1063_p0 = pnand %p1062_p8, %p1056_p2 }
  0xac   : > { %1066 = shalt.err (!%p1063_p0)
}
  0xad   : > { %p1632_p7 = scmp.ne.s32.totalorder %s1621_s7, 0  ;;  %p1633_p4 = scmp.ne.s32.totalorder %s1626_s10, 0 }
  0xae   : > { %s398_s18 = sand.u32 (!%p1633_p4), 1, %s1165_s25   ;;  %p1634_p9 = scmp.ne.s32.totalorder (!%p1633_p4), %s1615_s13, 0 }
  0xaf   : > { %827 = dma.hbm_to_vmem [thread:$0]  (!%p1632_p7), %s1451_s29, 128, %s375_s26, %s1388_s8  }
  0xb0   : > { %396 = sbr.rel (%p1633_p4) target bundleno = 234 (0xea), region = 44  ;;  %s786_s6 = sshll.u32 (!%p1633_p4), %s398_s18, 3 }
  0xb1   : > { %s399_s12 = scalar_lea.sflag (!%p1633_p4), [#allocation3], %s398_s18  ;;  %s402_s20 = scalar_lea.vmem (!%p1633_p4), [#allocation2], %s786_s6 }
  0xb7   : > { %1132 = dma.done.wait (%p1634_p9), %s399_s12, 128  }
  0xb8   : > { %1134 = vsyncadd (%p1634_p9), %s399_s12, 4294967168  ;;  %s407_s7 = sand.u32 1, %s1268_s30   ;;  %s411_s14 = scalar_lea.vmem [#allocation5], %s786_s6 }
  0xb9   : > { %s408_s24 = scalar_lea.sflag [#allocation6], %s407_s7 }
  0xba   : > { %1136 = dma.done.wait (%p1634_p9), %s408_s24, 256  }
  0xbb   : > { %1138 = vsyncadd (%p1634_p9), %s408_s24, 4294967040  ;;  %s420_s10 = scalar_lea.vmem [#allocation7], %s786_s6  ;;  %s426_s8 = scalar_lea.sflag [#allocation9], %s407_s7 }
  0xbc   : > { %s429_s29 = scalar_lea.vmem [#allocation8], %s786_s6 }
  0xbd   : > { %1140 = dma.done.wait (%p1634_p9), %s426_s8, 256  }
  0xbe   : > { %1142 = vsyncadd (%p1634_p9), %s426_s8, 4294967040  ;;  %p510_p8 = scmp.lt.s32.totalorder %s1173_s27, 1  ;;  %v525_v0 = vld [vmem:[%s429_s29] sm:$0xff]  ;;  %v526_v1 = vld [vmem:[%s402_s20] sm:$0xff]  ;;  %s438_s21 = scalar_lea.vmem [#allocation10], %s786_s6 }
  0xbf   : > { %v535_v2 = vld [vmem:[%s411_s14] sm:$0xff]  ;;  %v527_v3 = vsub.f32 %v526_v1, %v525_v0  ;;  %v545_v5 = vld [vmem:[%s420_s10] sm:$0xff]  ;;  %s491_s13 = sand.u32 1, %s1153_s22   ;;  %s797_s15 = sshll.u32 %s1173_s27, 7 }
  0xc0   : > { %s511_s30 = scalar_select %p510_p8, %s1173_s27, 1  ;;  %v536_v4 = vsub.f32 %v535_v2, %v525_v0  ;;  %v559_v6 = vld [vmem:[%s438_s21] sm:$0xff]  ;;  %v546_v7 = vsub.f32 %v545_v5, %v525_v0 }
  0xc1   : > { %907 = vrsqrt.f32 %v559_v6  ;;  %vm530_vm0 = vcmp.eq.f32.partialorder %v527_v3, inf  ;;  %vm532_vm1 = vcmp.eq.f32.partialorder %v527_v3, 0.0  ;;  %vm562_vm2 = vcmp.eq.f32.partialorder %v559_v6, inf  ;;  %s791_s17 = sshll.u32 %s491_s13, 3  ;;  %s1635_s16 = sld [smem:[#allocation28_spill]] }
  0xc2   : > { %s1655_s30 = smov (!%p510_p8, %s511_s30), 1  ;;  %909 = vrsqrt.f32 %v527_v3  ;;  %vm564_vm3 = vcmp.eq.f32.partialorder %v559_v6, 0.0  ;;  %v533_v11 = vand.u32 2147483648, %v527_v3  ;;  %vm539_vm4 = vcmp.eq.f32.partialorder %v536_v4, inf  ;;  %s493_s28 = scalar_lea.vmem [#allocation11], %s791_s17 }
  0xc3   : > { %s795_s0 = sshll.u32 %s1655_s30, 3  ;;  %911 = vrsqrt.f32 %v536_v4  ;;  %vm541_vm5 = vcmp.eq.f32.partialorder %v536_v4, 0.0  ;;  %v542_v15 = vand.u32 2147483648, %v536_v4  ;;  %vm549_vm6 = vcmp.eq.f32.partialorder %v546_v7, inf  ;;  %s595_s9 = sshll.u32 %s493_s28, 4  ;;  %s1526_s9 = int_to_ptr.vmem [resolvable:$true] %s595_s9 }
  0xc4   : > { %s515_s1 = scalar_lea.vmem %s1586_s5, %s795_s0  ;;  %913 = vrsqrt.f32 %v546_v7  ;;  %v565_v16 = vand.u32 2147483648, %v559_v6  ;;  %vm551_vm7 = vcmp.eq.f32.partialorder %v546_v7, 0.0  ;;  %v552_v19 = vand.u32 2147483648, %v546_v7  ;;  %s582_s6 = scalar_lea.sflag [#allocation4], %s491_s13 }
  0xc5   : > { %v567_v8 = vld [vmem:[%s515_s1] sm:$0xff]  ;;  %s1067_s12 = scalar_lea.vmem %s1526_s9, 128  ;;  %p1636_p1 = scmp.ne.s32.totalorder %s1618_s19, 0 }
  0xc6   : > { %915 = vrsqrt.f32 %v567_v8  ;;  %vm570_vm8 = vcmp.eq.f32.partialorder %v567_v8, inf  ;;  %v573_v24 = vand.u32 2147483648, %v567_v8  ;;  %vm572_vm9 = vcmp.eq.f32.partialorder %v567_v8, 0.0  ;;  %p1068_p5 = scmp.ne.s32.totalorder %s1526_s9, %s1067_s12  ;;  %s1188_s27 = smov [#allocation11]  }
  0xc7   : > { %s1524_s18 = scalar_lea.hbm %s1635_s16, %s797_s15  ;;  %s1071_s20 = sshll.u32 %s1188_s27, 4  ;;  %s1072_s20 = int_to_ptr.vmem [resolvable:$false] %s1071_s20 }
  0xc8   : > { %p1069_p6 = pnand %p1068_p5, %p1636_p1  ;;  %s1073_s7 = scalar_lea.vmem %s1072_s20, 256 }
  0xc9   : > { %p1074_p11 = scmp.lt.s32.totalorder %s1526_s9, %s1072_s20  ;;  %p1075_p12 = scmp.lt.s32.totalorder %s1073_s7, %s1067_s12 }
  0xca   : > { %p1070_p10 = pneg %p1069_p6 }
  0xcb   : > { %v908_v9 = vpop.eup %907  ;;  %p1076_p2 = por %p1075_p12, %p1074_p11 }
  0xcc   : > { %v910_v10 = vpop.eup %909  ;;  %v561_v12 = vmul.f32 %v908_v9, %v559_v6 }
  0xcd   : > { %v912_v13 = vpop.eup %911  ;;  %v529_v14 = vmul.f32 %v910_v10, %v527_v3  ;;  %p1077_p13 = pnand %p1076_p2, %p1070_p10 }
  0xce   : > { %v914_v17 = vpop.eup %913  ;;  %v538_v18 = vmul.f32 %v912_v13, %v536_v4  ;;  %v563_v20 = vsel %vm562_vm2, %v559_v6, %v561_v12 }
  0xcf   : > { %v531_v22 = vsel %vm530_vm0, %v527_v3, %v529_v14  ;;  %v548_v23 = vmul.f32 %v914_v17, %v546_v7  ;;  %v566_v30 = vsel %vm564_vm3, %v565_v16, %v563_v20 }
  0xd0   : > { %v916_v21 = vpop.eup %915  ;;  %v534_v25 = vsel %vm532_vm1, %v533_v11, %v531_v22  ;;  %v540_v26 = vsel %vm539_vm4, %v536_v4, %v538_v18 }
  0xd1   : > { %v569_v27 = vmul.f32 %v916_v21, %v567_v8  ;;  %v543_v28 = vsel %vm541_vm5, %v542_v15, %v540_v26  ;;  %v550_v29 = vsel %vm549_vm6, %v546_v7, %v548_v23 }
  0xd2   : > { %v544_v31 = vadd.f32 %v543_v28, %v534_v25  ;;  %v553_v32 = vsel %vm551_vm7, %v552_v19, %v550_v29 }
  0xd3   : > { %v571_v33 = vsel %vm570_vm8, %v567_v8, %v569_v27 }
  0xd4   : > { %v574_v34 = vsel %vm572_vm9, %v573_v24, %v571_v33  ;;  %v554_v35 = vadd.f32 %v553_v32, %v544_v31 }
  0xd5   : > { %v575_v36 = vadd.f32 %v574_v34, %v566_v30 }
  0xd6   : > { %v557_v37 = vmul.f32 0.5, %v554_v35 }
  0xd7   : > { %v577_v38 = vmul.f32 0.25, %v575_v36 }
  0xd8   : > { %v558_v39 = vadd.f32 %v557_v37, %v546_v7 }
  0xda   : > { %v578_v40 = vadd.f32 %v577_v38, %v558_v39 }
  0xdc   : > { %580 = vst [vmem:[%s493_s28] sm:$0xff] %v578_v40 }
  0xdd   : > { %1080 = shalt.err (!%p1077_p13)
}
  0xde   : > { %s1081_s24 = scalar_lea.hbm %s1524_s18, 128  ;;  %s1085_s8 = scalar_lea.hbm %s1635_s16, 256 }
  0xdf   : > { %p1082_p3 = scmp.ne.s32.totalorder %s1524_s18, %s1081_s24  ;;  %p1086_p4 = scmp.lt.u32.totalorder %s1524_s18, %s1635_s16 }
  0xe0   : > { %p1087_p9 = scmp.lt.u32.totalorder %s1085_s8, %s1081_s24  ;;  %p1089_p5 = scmp.lt.u32.totalorder %s1081_s24, %s1524_s18 }
  0xe1   : > { %p1083_p0 = pnand %p1082_p3, %p1636_p1 }
  0xe2   : > { %p1088_p8 = por %p1087_p9, %p1086_p4 }
  0xe3   : > { %p1084_p7 = pneg %p1083_p0 }
  0xe4   : > { %p1090_p6 = por %p1089_p5, %p1088_p8 }
  0xe6   : > { %p1091_p10 = pnand %p1090_p6, %p1084_p7 }
  0xe8   : > { %1094 = shalt.err (!%p1091_p10)
}
  0xe9   : > { %810 = dma.vmem_to_hbm [thread:$0]  (%p1636_p1), %s1526_s9, 128, %s1524_s18, %s582_s6  }
  0xea PF: > { %s1637_s0 = sld [smem:[#allocation16_spill]]  ;;  %s1638_s26 = sld [smem:[#allocation24_spill]] }
  0xeb   : > { %s1639_s3 = sld [smem:[#allocation20_spill]] }
  0xf0   : > { %s607_s1 = sand.u32 1, %s1637_s0   ;;  %p1640_p11 = scmp.ne.s32.totalorder %s1638_s26, 0 }
  0xf1   : > { %p1641_p12 = scmp.ge.s32.totalorder %s1639_s3, 2  ;;  %s608_s21 = scalar_lea.sflag [#allocation4], %s607_s1 }
  0xf3   : > { %p829_p2 = pnand %p1641_p12, %p1640_p11 }
  0xf5   : > { %1144 = dma.done.wait (!%p829_p2), %s608_s21, 128  }
  0xf6   : > { %1146 = vsyncadd (!%p829_p2), %s608_s21, 4294967168  ;;  %s28_s29 = sadd.s32 1, %s1639_s3   ;;  %s1642_s13 = sld [smem:[#allocation17_spill]] }
  0xf7   : > { %p25_p13 = scmp.ge.s32.totalorder %s28_s29, 4   ;;  %s1643_s23 = sld [smem:[#allocation22_spill]] }
  0xf8   : > { %s1644_s19 = sld [smem:[#allocation18_spill]]  ;;  %s1645_s26 = sld [smem:[#allocation23_spill]] }
  0xf9   : > { %s1646_s27 = sld [smem:[#allocation19_spill]]  ;;  %s1647_s28 = sld [smem:[#allocation21_spill]] }
  0xfa   : > { %s1648_s21 = smov %s1153_s22  ;;  %s1650_s24 = smov %s1165_s25 }
  0xfb   :  { %27 = sbr.rel (!%p25_p13) target bundleno = 17 (0x11), region = 144 }
  0xfc   : > { %s1649_s22 = smov %s1642_s13 }
  0xfe   : > { %s1651_s25 = smov %s1644_s19 }
 0x102   :  { %613 = vsyncpa [#allocation3], 1 }
 0x103   :  { %615 = vsyncpa [#allocation3 + $0x1], 1 }
 0x104   :  { %616 = vsyncpa [#allocation6], 1 }
 0x105   :  { %618 = vsyncpa [#allocation6 + $0x1], 1 }
 0x106   :  { %619 = vsyncpa [#allocation9], 1 }
 0x107   :  { %621 = vsyncpa [#allocation9 + $0x1], 1 }
 0x108   :  { %622 = vsyncpa [#allocation4], 1 }
 0x109   :  { %624 = vsyncpa [#allocation4 + $0x1], 1 }

</bundles_post_ra>
